<compile_context>
chip_gen: v7x
topology: tpu7x:2x2x1
jax: 0.10.0
libtpu: 0.0.40
codegen_flags: <defaults>
</compile_context>

<pallas_src>
import math
from functools import partial

import jax
import jax.numpy as jnp
from jax.experimental import pallas as pl
from jax.experimental.pallas import tpu as pltpu


# ----------------------------------------------------------------------------
# Parameter construction (same math as GaussianSmoothing.__init__)
# ----------------------------------------------------------------------------
def _gaussian_taps_1d(size, sigma):
    """Normalized 1D gaussian taps as plain Python floats (compile-time consts)."""
    mean = (size - 1) / 2.0
    g = [math.exp(-(((i - mean) / float(sigma)) ** 2) / 2.0) for i in range(size)]
    s = sum(g)
    return tuple(gi / s for gi in g)


def gaussian_kernel_2d(kernel_size, sigma):
    """Full 2D normalized gaussian (used only for the conv reference check)."""
    ks = [kernel_size] * 2 if isinstance(kernel_size, (int, float)) else list(kernel_size)
    sg = [sigma] * 2 if isinstance(sigma, (int, float)) else list(sigma)
    grids = jnp.meshgrid(
        *[jnp.arange(s, dtype=jnp.float32) for s in ks], indexing="ij"
    )
    kernel = jnp.ones((), dtype=jnp.float32)
    for size, std, mgrid in zip(ks, sg, grids):
        mean = (size - 1) / 2.0
        kernel = kernel * (
            1.0 / (std * math.sqrt(2.0 * math.pi))
            * jnp.exp(-(((mgrid - mean) / std) ** 2) / 2.0)
        )
    kernel = kernel / jnp.sum(kernel)
    return kernel  # (kH, kW), float32


# ----------------------------------------------------------------------------
# VMEM budgeting helpers (generation-aware, dtype-aware, intermediates counted)
# ----------------------------------------------------------------------------
def _round_up(v, m):
    return -(-v // m) * m


def _vmem_capacity_bytes():
    try:
        return int(pltpu.get_tpu_info().vmem_capacity_bytes)
    except Exception:
        return 64 << 20  # v7x per-TC VMEM -> safe lower bound across generations


def _step_bytes(ct, H, W, Ho, Wo_store, in_b, out_b, c_b, row_w):
    """Per-grid-step VMEM estimate: double-buffered I/O blocks + intermediates."""
    io = ct * (H * W * in_b + Ho * Wo_store * out_b)
    interm = ct * (
        H * W * c_b            # compute-dtype copy of the input slab
        + 2 * H * row_w * c_b  # row-pass accumulator + one shifted temporary
        + Ho * row_w * 4       # f32 column-pass accumulator
    )
    return 2 * io + interm


def _pick_c_tile(NC, H, W, Ho, Wo_store, in_dtype, out_dtype, compute_dtype,
                 row_w, budget):
    in_b = jnp.dtype(in_dtype).itemsize
    out_b = jnp.dtype(out_dtype).itemsize
    c_b = jnp.dtype(compute_dtype).itemsize
    chosen = 1
    for ct in range(NC, 0, -1):
        if NC % ct:
            continue
        if _step_bytes(ct, H, W, Ho, Wo_store, in_b, out_b, c_b, row_w) <= budget:
            chosen = ct
            break
    # v7x has 2 TensorCores: prefer >= 2 parallel grid steps when splitting
    # still leaves a reasonably large (>= 1 MiB input) slab per step.
    if NC // chosen == 1 and chosen % 2 == 0 and (chosen // 2) * H * W * in_b >= (1 << 20):
        chosen //= 2
    return chosen


# ----------------------------------------------------------------------------
# Pallas kernel: one (C_TILE, H, W) slab per grid step, separable two-pass.
# ----------------------------------------------------------------------------
def _gauss_smooth_kernel(x_ref, o_ref, *, w_h, w_w, kH, kW, Ho, Wo,
                         use_roll, row_dtype):
    # x_ref: (C_TILE, H, W) input slab in VMEM
    # o_ref: (C_TILE, Ho, Wo_store) output slab in VMEM (possibly lane-padded)
    W = x_ref.shape[-1]
    Wo_store = o_ref.shape[-1]

    x = x_ref[...].astype(row_dtype)

    # ---- Row pass: kW taps along the lane (W) axis ----
    if use_roll:
        # Full-width accumulation; shifts land on the XLU slot instead of
        # materializing kW-1 misaligned lane-slice copies.
        # roll(x, W-dj)[.., c] == x[.., (c+dj) % W]; no wrap for the valid
        # columns c < Wo since c+dj <= W-1.
        row = w_w[0] * x
        for dj in range(1, kW):
            row = row + w_w[dj] * pltpu.roll(x, W - dj, axis=-1)
        row_w = W
    else:
        row = w_w[0] * x[:, :, 0:Wo]
        for dj in range(1, kW):
            row = row + w_w[dj] * x[:, :, dj:dj + Wo]
        row_w = Wo

    # ---- Column pass: kH taps along the sublane (H) axis, f32 accumulation ----
    out = w_h[0] * row[:, 0:Ho, :].astype(jnp.float32)
    for di in range(1, kH):
        out = out + w_h[di] * row[:, di:di + Ho, :].astype(jnp.float32)

    # ---- Lane-dense store (pad-or-slice to the stored width) ----
    if row_w >= Wo_store:
        out_store = out[:, :, :Wo_store]
    else:
        pad = jnp.zeros(out.shape[:-1] + (Wo_store - row_w,), dtype=out.dtype)
        out_store = jnp.concatenate([out, pad], axis=-1)
    o_ref[...] = out_store.astype(o_ref.dtype)


# ----------------------------------------------------------------------------
# Wrapper
# ----------------------------------------------------------------------------
def gaussian_smoothing_2d(x, kernel_size, sigma, *, c_tile=None):
    """Depthwise 'valid' gaussian conv (== F.conv2d(x, weight, groups=C)).

    x: (N, C, H, W). kernel_size / sigma: scalars or length-2 sequences.
    """
    N, C, H, W = x.shape
    ks = [kernel_size] * 2 if isinstance(kernel_size, (int, float)) else list(kernel_size)
    sg = [sigma] * 2 if isinstance(sigma, (int, float)) else list(sigma)
    kH, kW = int(ks[0]), int(ks[1])
    assert 1 <= kH <= H and 1 <= kW <= W, (kH, kW, H, W)
    Ho, Wo = H - kH + 1, W - kW + 1

    # Deterministic, separable taps baked into the kernel as immediates.
    w_h = _gaussian_taps_1d(kH, sg[0])
    w_w = _gaussian_taps_1d(kW, sg[1])

    # Fuse batch and channel axes (depthwise conv treats them identically).
    NC = N * C
    xf = x.reshape(NC, H, W)

    # Lane-dense output: pad stored width to a multiple of 128 if it costs
    # <= 25% extra store bytes (always true for Wo already a multiple of 128).
    Wo_pad = _round_up(Wo, 128)
    Wo_store = Wo_pad if Wo_pad * 4 <= Wo * 5 else Wo

    # Row-pass strategy: XLU roll needs a lane-aligned last dim; otherwise use
    # the (proven) slice form, which Mosaic lowers for narrow / unaligned W.
    use_roll = (W % 128 == 0)
    row_w = W if use_roll else Wo

    # Compute dtype: keep bf16 inputs in bf16 for the row pass (v6e/v7x),
    # everything else in f32 (v5e VPU has no bf16). Column pass accumulates f32.
    compute_dtype = jnp.bfloat16 if x.dtype == jnp.bfloat16 else jnp.float32

    cap = _vmem_capacity_bytes()
    budget = max(cap // 4, 8 << 20)  # ~1/4 physical VMEM for the working set

    if c_tile is None:
        c_tile = _pick_c_tile(NC, H, W, Ho, Wo_store, x.dtype, x.dtype,
                              compute_dtype, row_w, budget)
    else:
        assert NC % c_tile == 0, (
            f"c_tile={c_tile} must divide N*C={NC} (would silently drop channels)")

    est = _step_bytes(
        c_tile, H, W, Ho, Wo_store,
        jnp.dtype(x.dtype).itemsize, jnp.dtype(x.dtype).itemsize,
        jnp.dtype(compute_dtype).itemsize, row_w)
    vmem_limit = int(min(cap * 7 // 8, max(32 << 20, 2 * est)))

    kernel = partial(_gauss_smooth_kernel, w_h=w_h, w_w=w_w, kH=kH, kW=kW,
                     Ho=Ho, Wo=Wo, use_roll=use_roll, row_dtype=compute_dtype)

    out = pl.pallas_call(
        kernel,
        out_shape=jax.ShapeDtypeStruct((NC, Ho, Wo_store), x.dtype),
        grid=(NC // c_tile,),
        in_specs=[
            pl.BlockSpec((c_tile, H, W), lambda i: (i, 0, 0)),
        ],
        out_specs=pl.BlockSpec((c_tile, Ho, Wo_store), lambda i: (i, 0, 0)),
        compiler_params=pltpu.CompilerParams(
            dimension_semantics=("parallel",),
            vmem_limit_bytes=vmem_limit,
        ),
    )(xf)

    if Wo_store != Wo:
        out = out[:, :, :Wo]
    return out.reshape(N, C, Ho, Wo)


# ----------------------------------------------------------------------------
# Driver
# ----------------------------------------------------------------------------
if __name__ == "__main__":
    channels = 4
    kernel_size = 3
    sigma = 1.0

    key = jax.random.PRNGKey(0)
    x = jax.random.normal(key, (2, channels, 16, 16), dtype=jnp.float32)

    out = gaussian_smoothing_2d(x, kernel_size, sigma)
    out = jax.block_until_ready(out)

    # Reference: depthwise conv2d exactly as F.conv2d(input, weight, groups=C),
    # using the full (non-separated) 2D gaussian weight buffer.
    w2d = gaussian_kernel_2d(kernel_size, sigma)                        # (kH, kW)
    w_full = jnp.broadcast_to(w2d[None, None], (channels, 1) + w2d.shape)
    ref = jax.lax.conv_general_dilated(
        x,
        w_full,
        window_strides=(1, 1),
        padding="VALID",
        dimension_numbers=("NCHW", "OIHW", "NCHW"),
        feature_group_count=channels,
    )

    assert out.shape == ref.shape, (out.shape, ref.shape)
    assert jnp.allclose(out, ref, atol=1e-5, rtol=1e-5), float(
        jnp.max(jnp.abs(out - ref))
    )
    print("KERNEL_OK")
</pallas_src>

<mosaic_0001>
module attributes {stable_mosaic.version = 11 : i64} {
  func.func @_gauss_smooth_kernel(%arg0: i32, %arg1: memref<8x16x16xf32, #tpu.memory_space<vmem>>, %arg2: memref<8x14x14xf32, #tpu.memory_space<vmem>>) attributes {dimension_semantics = [#tpu.dimension_semantics<parallel>], iteration_bounds = array<i64: 1>, scalar_prefetch = 0 : i64, scratch_operands = 0 : i64, tpu.core_type = #tpu.core_type<tc>, window_params = [{transform_indices = @transform_0, window_bounds = array<i64: 8, 16, 16>}, {transform_indices = @transform_1, window_bounds = array<i64: 8, 14, 14>}]} {
    %c0 = arith.constant 0 : index
    %c0_0 = arith.constant 0 : index
    %c0_1 = arith.constant 0 : index
    %0 = vector.load %arg1[%c0, %c0_0, %c0_1] : memref<8x16x16xf32, #tpu.memory_space<vmem>>, vector<8x16x16xf32>
    %1 = vector.extract_strided_slice %0 {offsets = [0, 0, 0], sizes = [8, 16, 14], strides = [1, 1, 1]} : vector<8x16x16xf32> to vector<8x16x14xf32>
    %cst = arith.constant 0.274068624 : f32
    %2 = vector.broadcast %cst : f32 to vector<8x16x14xf32>
    %3 = arith.mulf %2, %1 : vector<8x16x14xf32>
    %4 = vector.extract_strided_slice %0 {offsets = [0, 0, 1], sizes = [8, 16, 14], strides = [1, 1, 1]} : vector<8x16x16xf32> to vector<8x16x14xf32>
    %cst_2 = arith.constant 0.451862752 : f32
    %5 = vector.broadcast %cst_2 : f32 to vector<8x16x14xf32>
    %6 = arith.mulf %5, %4 : vector<8x16x14xf32>
    %7 = arith.addf %3, %6 : vector<8x16x14xf32>
    %8 = vector.extract_strided_slice %0 {offsets = [0, 0, 2], sizes = [8, 16, 14], strides = [1, 1, 1]} : vector<8x16x16xf32> to vector<8x16x14xf32>
    %cst_3 = arith.constant 0.274068624 : f32
    %9 = vector.broadcast %cst_3 : f32 to vector<8x16x14xf32>
    %10 = arith.mulf %9, %8 : vector<8x16x14xf32>
    %11 = arith.addf %7, %10 : vector<8x16x14xf32>
    %12 = vector.extract_strided_slice %11 {offsets = [0, 0, 0], sizes = [8, 14, 14], strides = [1, 1, 1]} : vector<8x16x14xf32> to vector<8x14x14xf32>
    %cst_4 = arith.constant 0.274068624 : f32
    %13 = vector.broadcast %cst_4 : f32 to vector<8x14x14xf32>
    %14 = arith.mulf %13, %12 : vector<8x14x14xf32>
    %15 = vector.extract_strided_slice %11 {offsets = [0, 1, 0], sizes = [8, 14, 14], strides = [1, 1, 1]} : vector<8x16x14xf32> to vector<8x14x14xf32>
    %cst_5 = arith.constant 0.451862752 : f32
    %16 = vector.broadcast %cst_5 : f32 to vector<8x14x14xf32>
    %17 = arith.mulf %16, %15 : vector<8x14x14xf32>
    %18 = arith.addf %14, %17 : vector<8x14x14xf32>
    %19 = vector.extract_strided_slice %11 {offsets = [0, 2, 0], sizes = [8, 14, 14], strides = [1, 1, 1]} : vector<8x16x14xf32> to vector<8x14x14xf32>
    %cst_6 = arith.constant 0.274068624 : f32
    %20 = vector.broadcast %cst_6 : f32 to vector<8x14x14xf32>
    %21 = arith.mulf %20, %19 : vector<8x14x14xf32>
    %22 = arith.addf %18, %21 : vector<8x14x14xf32>
    %c0_7 = arith.constant 0 : index
    %c0_8 = arith.constant 0 : index
    %c0_9 = arith.constant 0 : index
    %23 = vector.load %arg2[%c0_7, %c0_8, %c0_9] : memref<8x14x14xf32, #tpu.memory_space<vmem>>, vector<8x14x14xf32>
    tpu.vector_store %arg2[%c0_7, %c0_8, %c0_9], %22 {strides = array<i32>} : memref<8x14x14xf32, #tpu.memory_space<vmem>>, vector<8x14x14xf32>,
    return
  }
  func.func @transform_0(%arg0: i32) -> (i32, i32, i32) {
    %c0_i32 = arith.constant 0 : i32
    %c0_i32_0 = arith.constant 0 : i32
    %c0_i32_1 = arith.constant 0 : i32
    return %arg0, %c0_i32, %c0_i32_0 : i32, i32, i32
  }
  func.func @transform_1(%arg0: i32) -> (i32, i32, i32) {
    %c0_i32 = arith.constant 0 : i32
    %c0_i32_0 = arith.constant 0 : i32
    %c0_i32_1 = arith.constant 0 : i32
    return %arg0, %c0_i32, %c0_i32_0 : i32, i32, i32
  }
}

</mosaic_0001>

<bundles_post_ra>
// kernel: tpu_custom_call.1
= control target key start
LH: loop header
LB: loop body
LE: loop exit
PB: predicated region body
PF: predicated region fallthrough
CT: control target
= control target key end

     0   :  { %6 = vsyncpa [#allocation3], 0  ;;  %s460_s6 = smov [#allocation2]   ;;  %s626_s0 = inlined_call_operand.hbm [shape: f32[8,16,16], index: 0, kind: input, shape index: {}]   ;;  %s627_s1 = inlined_call_operand.vmem [shape: f32[8,14,14], index: 1, kind: output, shape index: {}]  }
   0x1   :  { %s12_s7 = sshll.u32 %s460_s6, 4  ;;  %s436_s10 = scalar_lea.hbm %s626_s0, 2048  ;;  %s13_s7 = int_to_ptr.vmem [resolvable:$true] %s12_s7 }
   0x2   :  { %p437_p0 = scmp.ne.s32.totalorder %s626_s0, %s436_s10  ;;  %p440_p1 = scmp.lt.u32.totalorder %s436_s10, %s626_s0 }
   0x4   :  { %p442_p2 = pnand %p440_p1, %p437_p0 }
   0x6   :  { %445 = shalt.err (!%p442_p2)
}
   0x7   :  { %s446_s15 = scalar_lea.vmem %s13_s7, 2048  ;;  %p451_p4 = scmp.lt.s32.totalorder %s13_s7, %s13_s7 }
   0x8   :  { %p447_p3 = scmp.ne.s32.totalorder %s13_s7, %s446_s15  ;;  %p452_p5 = scmp.lt.s32.totalorder %s446_s15, %s446_s15 }
   0xa   :  { %p453_p6 = por %p452_p5, %p451_p4 }
   0xc   :  { %p454_p7 = pnand %p453_p6, %p447_p3 }
   0xe   :  { %457 = shalt.err (!%p454_p7)
}
   0xf   :  { %s461_s16 = smov 128   ;;  %s462_s17 = smov 8  }
  0x10   :  { %18 = dma.hbm_to_vmem [thread:$0]  %s626_s0, 2048, %s13_s7, [#allocation3], %s461_s16, %s461_s16, %s462_s17  }
  0x11   :  { %458 = dma.done.wait [#allocation3], 2048  }
  0x12   :  { %459 = vsyncadd [#allocation3], 4294965248  ;;  %v24_v0 = vld [vmem:[#allocation2 + $0x10] sm:$0xff]  ;;  %v22_v1 = vld [vmem:[#allocation2] sm:$0xff]  ;;  %s463_s20 = smov 127   ;;  %s464_s0 = smov 126  }
  0x13   :  { %v25_v2 = vld [vmem:[#allocation2 + $0x18] sm:$0xff]  ;;  %v56_v3 = vmul.f32 0.45186275, %v24_v0  ;;  %v54_v4 = vmul.f32 0.45186275, %v22_v1  ;;  %v23_v5 = vld [vmem:[#allocation2 + $0x8] sm:$0xff] }
  0x14   :  { %v57_v6 = vmul.f32 0.45186275, %v25_v2  ;;  %v55_v7 = vmul.f32 0.45186275, %v23_v5  ;;  %v27_v8 = vld [vmem:[#allocation2 + $0x28] sm:$0xff]  ;;  %v26_v9 = vld [vmem:[#allocation2 + $0x20] sm:$0xff] }
  0x15   :  { %90 = vrot.lane.b32.xlu1 %v56_v3, %s463_s20  ;;  %86 = vrot.lane.b32.xlu0 %v54_v4, %s463_s20  ;;  %v59_v10 = vmul.f32 0.45186275, %v27_v8  ;;  %v58_v11 = vmul.f32 0.45186275, %v26_v9  ;;  %v29_v12 = vld [vmem:[#allocation2 + $0x38] sm:$0xff]  ;;  %v28_v13 = vld [vmem:[#allocation2 + $0x30] sm:$0xff] }
  0x16   :  { %v61_v14 = vmul.f32 0.45186275, %v29_v12  ;;  %v60_v15 = vmul.f32 0.45186275, %v28_v13  ;;  %v31_v16 = vld [vmem:[#allocation2 + $0x48] sm:$0xff]  ;;  %v30_v17 = vld [vmem:[#allocation2 + $0x40] sm:$0xff] }
  0x17   :  { %v63_v18 = vmul.f32 0.45186275, %v31_v16  ;;  %v62_v19 = vmul.f32 0.45186275, %v30_v17  ;;  %v33_v20 = vld [vmem:[#allocation2 + $0x58] sm:$0xff]  ;;  %v32_v21 = vld [vmem:[#allocation2 + $0x50] sm:$0xff] }
  0x18   :  { %v65_v22 = vmul.f32 0.45186275, %v33_v20  ;;  %v64_v23 = vmul.f32 0.45186275, %v32_v21  ;;  %v35_v24 = vld [vmem:[#allocation2 + $0x68] sm:$0xff]  ;;  %v34_v25 = vld [vmem:[#allocation2 + $0x60] sm:$0xff] }
  0x19   :  { %92 = vrot.lane.b32.xlu1 %v57_v6, %s463_s20  ;;  %88 = vrot.lane.b32.xlu0 %v55_v7, %s463_s20  ;;  %v67_v26 = vmul.f32 0.45186275, %v35_v24  ;;  %v66_v27 = vmul.f32 0.45186275, %v34_v25  ;;  %v37_v28 = vld [vmem:[#allocation2 + $0x78] sm:$0xff]  ;;  %v36_v29 = vld [vmem:[#allocation2 + $0x70] sm:$0xff] }
  0x1a   :  { %v69_v30 = vmul.f32 0.45186275, %v37_v28  ;;  %v68_v31 = vmul.f32 0.45186275, %v36_v29  ;;  %v38_v32 = vmul.f32 0.27406862, %v22_v1 }
  0x1b   :  { %v39_v33 = vmul.f32 0.27406862, %v23_v5  ;;  %v40_v34 = vmul.f32 0.27406862, %v24_v0  ;;  %v41_v35 = vmul.f32 0.27406862, %v25_v2 }
  0x1c   :  { %v43_v36 = vmul.f32 0.27406862, %v27_v8  ;;  %v42_v37 = vmul.f32 0.27406862, %v26_v9  ;;  %v45_v38 = vmul.f32 0.27406862, %v29_v12 }
  0x1d   :  { %96 = vrot.lane.b32.xlu1 %v59_v10, %s463_s20  ;;  %94 = vrot.lane.b32.xlu0 %v58_v11, %s463_s20  ;;  %v44_v39 = vmul.f32 0.27406862, %v28_v13  ;;  %v47_v40 = vmul.f32 0.27406862, %v31_v16  ;;  %v503_v41 = vmul.f32 0.27406862, %v30_v17 }
  0x1e   :  { %v506_v42 = vmul.f32 0.27406862, %v33_v20  ;;  %v508_v43 = vmul.f32 0.27406862, %v32_v21  ;;  %v512_v44 = vmul.f32 0.27406862, %v35_v24 }
  0x1f   :  { %v514_v45 = vmul.f32 0.27406862, %v34_v25  ;;  %v518_v46 = vmul.f32 0.27406862, %v37_v28  ;;  %v520_v47 = vmul.f32 0.27406862, %v36_v29 }
  0x20   :  { %vm410_vm0 = vcmask 111616   ;;  %vm278_vm1 = vcmask 1046528   ;;  %vm351_vm2 = vcmask 1045504   ;;  %vm408_vm3 = vcmask 113664  }
  0x21   :  { %100 = vrot.lane.b32.xlu1 %v61_v14, %s463_s20  ;;  %98 = vrot.lane.b32.xlu0 %v60_v15, %s463_s20 }
  0x25   :  { %104 = vrot.lane.b32.xlu1 %v63_v18, %s463_s20  ;;  %102 = vrot.lane.b32.xlu0 %v62_v19, %s463_s20 }
  0x29   :  { %108 = vrot.lane.b32.xlu1 %v65_v22, %s463_s20  ;;  %106 = vrot.lane.b32.xlu0 %v64_v23, %s463_s20 }
  0x2d   :  { %112 = vrot.lane.b32.xlu1 %v67_v26, %s463_s20  ;;  %110 = vrot.lane.b32.xlu0 %v66_v27, %s463_s20 }
  0x31   :  { %116 = vrot.lane.b32.xlu1 %v69_v30, %s463_s20  ;;  %114 = vrot.lane.b32.xlu0 %v68_v31, %s463_s20 }
  0x35   :  { %168 = vrot.lane.b32.xlu1 %v39_v33, %s464_s0  ;;  %166 = vrot.lane.b32.xlu0 %v38_v32, %s464_s0 }
  0x39   :  { %172 = vrot.lane.b32.xlu1 %v41_v35, %s464_s0  ;;  %170 = vrot.lane.b32.xlu0 %v40_v34, %s464_s0 }
  0x3d   :  { %176 = vrot.lane.b32.xlu1 %v43_v36, %s464_s0  ;;  %174 = vrot.lane.b32.xlu0 %v42_v37, %s464_s0 }
  0x41   :  { %180 = vrot.lane.b32.xlu1 %v45_v38, %s464_s0  ;;  %178 = vrot.lane.b32.xlu0 %v44_v39, %s464_s0 }
  0x45   :  { %184 = vrot.lane.b32.xlu1 %v47_v40, %s464_s0  ;;  %182 = vrot.lane.b32.xlu0 %v503_v41, %s464_s0 }
  0x49   :  { %188 = vrot.lane.b32.xlu1 %v506_v42, %s464_s0  ;;  %186 = vrot.lane.b32.xlu0 %v508_v43, %s464_s0 }
  0x4d   :  { %192 = vrot.lane.b32.xlu1 %v512_v44, %s464_s0  ;;  %190 = vrot.lane.b32.xlu0 %v514_v45, %s464_s0 }
  0x51   :  { %196 = vrot.lane.b32.xlu1 %v518_v46, %s464_s0  ;;  %194 = vrot.lane.b32.xlu0 %v520_v47, %s464_s0 }
  0x87   :  { %v91_v48 = vpop.permute.xlu1 %90  ;;  %v87_v49 = vpop.permute.xlu0 %86 }
  0x88   :  { %v134_v0 = vadd.f32 %v87_v49, %v38_v32  ;;  %v136_v10 = vadd.f32 %v91_v48, %v40_v34 }
  0x8b   :  { %v93_v50 = vpop.permute.xlu1 %92  ;;  %v89_v51 = vpop.permute.xlu0 %88 }
  0x8c   :  { %v135_v1 = vadd.f32 %v89_v51, %v39_v33  ;;  %v137_v6 = vadd.f32 %v93_v50, %v41_v35 }
  0x8f   :  { %v97_v52 = vpop.permute.xlu1 %96  ;;  %v95_v53 = vpop.permute.xlu0 %94 }
  0x90   :  { %v139_v11 = vadd.f32 %v97_v52, %v43_v36  ;;  %v138_v12 = vadd.f32 %v95_v53, %v42_v37 }
  0x93   :  { %v101_v54 = vpop.permute.xlu1 %100  ;;  %v99_v55 = vpop.permute.xlu0 %98 }
  0x94   :  { %v141_v20 = vadd.f32 %v101_v54, %v45_v38  ;;  %v140_v21 = vadd.f32 %v99_v55, %v44_v39 }
  0x97   :  { %v105_v56 = vpop.permute.xlu1 %104  ;;  %v103_v57 = vpop.permute.xlu0 %102 }
  0x98   :  { %v143_v24 = vadd.f32 %v105_v56, %v47_v40  ;;  %v142_v40 = vadd.f32 %v103_v57, %v503_v41 }
  0x9b   :  { %v109_v58 = vpop.permute.xlu1 %108  ;;  %v524_v59 = vpop.permute.xlu0 %106 }
  0x9c   :  { %v145_v50 = vadd.f32 %v109_v58, %v506_v42 }
  0x9f   :  { %v526_v60 = vpop.permute.xlu1 %112  ;;  %v528_v61 = vpop.permute.xlu0 %110 }
  0xa3   :  { %v530_v62 = vpop.permute.xlu1 %116  ;;  %v532_v63 = vpop.permute.xlu0 %114 }
  0xa7   :  { %v169_v2 = vpop.permute.xlu1 %168  ;;  %v167_v3 = vpop.permute.xlu0 %166 }
  0xa8   :  { %v215_v4 = vadd.f32 %v169_v2, %v135_v1  ;;  %v214_v5 = vadd.f32 %v167_v3, %v134_v0 }
  0xaa   :  { %v231_v7 = vmul.f32 0.27406862, %v215_v4  ;;  %v247_v8 = vmul.f32 0.45186275, %v215_v4  ;;  %v230_v9 = vmul.f32 0.27406862, %v214_v5 }
  0xab   :  { %v246_v13 = vmul.f32 0.45186275, %v214_v5  ;;  %v173_v14 = vpop.permute.xlu1 %172  ;;  %v171_v15 = vpop.permute.xlu0 %170 }
  0xac   :  { %v280_v16 = vrot.slane %v247_v8, 1  ;;  %v353_v17 = vrot.slane %v231_v7, 2  ;;  %v352_v18 = vrot.slane %v230_v9, 2  ;;  %v217_v19 = vadd.f32 %v173_v14, %v137_v6 }
  0xad   :  { %v279_v22 = vrot.slane %v246_v13, 1  ;;  %v216_v23 = vadd.f32 %v171_v15, %v136_v10  ;;  %v144_v6 = vadd.f32 %v524_v59, %v508_v43 }
  0xae   :  { %v320_v25 = vadd.f32 %v280_v16, %v231_v7  ;;  %v233_v26 = vmul.f32 0.27406862, %v217_v19  ;;  %v249_v27 = vmul.f32 0.45186275, %v217_v19  ;;  %v354_v29 = vsel %vm351_vm2, %v352_v18, %v353_v17 }
  0xaf   :  { %v281_v28 = vsel %vm278_vm1, %v279_v22, %v280_v16  ;;  %v232_v30 = vmul.f32 0.27406862, %v216_v23  ;;  %v248_v31 = vmul.f32 0.45186275, %v216_v23  ;;  %v177_v32 = vpop.permute.xlu1 %176  ;;  %v175_v33 = vpop.permute.xlu0 %174 }
  0xb0   :  { %v393_v34 = vadd.f32 %v353_v17, %v320_v25  ;;  %v319_v35 = vadd.f32 %v281_v28, %v230_v9  ;;  %v283_v36 = vrot.slane %v249_v27, 1  ;;  %v356_v37 = vrot.slane %v233_v26, 2 }
  0xb1   :  { %v282_v38 = vrot.slane %v248_v31, 1  ;;  %v355_v39 = vrot.slane %v232_v30, 2  ;;  %v219_v48 = vadd.f32 %v177_v32, %v139_v11  ;;  %v218_v49 = vadd.f32 %v175_v33, %v138_v12 }
  0xb2   :  { %411 = vst.msk [vmem:[%s627_s1 + $0x8] sm:$0x3f] %vm410_vm0, %v393_v34  ;;  %v392_v51 = vadd.f32 %v354_v29, %v319_v35  ;;  %v322_v52 = vadd.f32 %v283_v36, %v233_v26  ;;  %v147_v27 = vadd.f32 %v526_v60, %v512_v44  ;;  %v146_v32 = vadd.f32 %v528_v61, %v514_v45 }
  0xb3   :  { %v284_v53 = vsel %vm278_vm1, %v282_v38, %v283_v36  ;;  %v357_v54 = vsel %vm351_vm2, %v355_v39, %v356_v37  ;;  %v235_v55 = vmul.f32 0.27406862, %v219_v48  ;;  %v251_v56 = vmul.f32 0.45186275, %v219_v48  ;;  %v181_v0 = vpop.permute.xlu1 %180  ;;  %v179_v1 = vpop.permute.xlu0 %178 }
  0xb4   :  { %409 = vst.msk [vmem:[%s627_s1] sm:$0xff] %vm408_vm3, %v392_v51  ;;  %v395_v41 = vadd.f32 %v356_v37, %v322_v52  ;;  %v321_v42 = vadd.f32 %v284_v53, %v232_v30  ;;  %v234_v57 = vmul.f32 0.27406862, %v218_v49  ;;  %v250_v58 = vmul.f32 0.45186275, %v218_v49 }
  0xb5   :  { %v286_v2 = vrot.slane %v251_v56, 1  ;;  %v359_v3 = vrot.slane %v235_v55, 2  ;;  %v221_v4 = vadd.f32 %v181_v0, %v141_v20  ;;  %v220_v5 = vadd.f32 %v179_v1, %v140_v21 }
  0xb6   :  { %413 = vst.msk [vmem:[%s627_s1 + $0x18] sm:$0x3f] %vm410_vm0, %v395_v41  ;;  %v394_v7 = vadd.f32 %v357_v54, %v321_v42  ;;  %v285_v8 = vrot.slane %v250_v58, 1  ;;  %v358_v9 = vrot.slane %v234_v57, 2  ;;  %v149_v45 = vadd.f32 %v530_v62, %v518_v46 }
  0xb7   :  { %v324_v10 = vadd.f32 %v286_v2, %v235_v55  ;;  %v237_v11 = vmul.f32 0.27406862, %v221_v4  ;;  %v253_v12 = vmul.f32 0.45186275, %v221_v4  ;;  %v236_v13 = vmul.f32 0.27406862, %v220_v5  ;;  %v185_v14 = vpop.permute.xlu1 %184  ;;  %v183_v15 = vpop.permute.xlu0 %182 }
  0xb8   :  { %412 = vst.msk [vmem:[%s627_s1 + $0x10] sm:$0xff] %vm408_vm3, %v394_v7  ;;  %v287_v43 = vsel %vm278_vm1, %v285_v8, %v286_v2  ;;  %v360_v59 = vsel %vm351_vm2, %v358_v9, %v359_v3  ;;  %v252_v16 = vmul.f32 0.45186275, %v220_v5  ;;  %v223_v17 = vadd.f32 %v185_v14, %v143_v24 }
  0xb9   :  { %v397_v18 = vadd.f32 %v359_v3, %v324_v10  ;;  %v323_v19 = vadd.f32 %v287_v43, %v234_v57  ;;  %v289_v20 = vrot.slane %v253_v12, 1  ;;  %v362_v21 = vrot.slane %v237_v11, 2 }
  0xba   :  { %v288_v22 = vrot.slane %v252_v16, 1  ;;  %v361_v23 = vrot.slane %v236_v13, 2  ;;  %v239_v25 = vmul.f32 0.27406862, %v223_v17  ;;  %v255_v26 = vmul.f32 0.45186275, %v223_v17 }
  0xbb   :  { %415 = vst.msk [vmem:[%s627_s1 + $0x28] sm:$0x3f] %vm410_vm0, %v397_v18  ;;  %v396_v28 = vadd.f32 %v360_v59, %v323_v19  ;;  %v326_v29 = vadd.f32 %v289_v20, %v237_v11  ;;  %v222_v30 = vadd.f32 %v183_v15, %v142_v40  ;;  %v189_v24 = vpop.permute.xlu1 %188  ;;  %v187_v31 = vpop.permute.xlu0 %186  ;;  %v148_v7 = vadd.f32 %v532_v63, %v520_v47 }
  0xbc   :  { %v290_v33 = vsel %vm278_vm1, %v288_v22, %v289_v20  ;;  %v292_v34 = vrot.slane %v255_v26, 1  ;;  %v365_v35 = vrot.slane %v239_v25, 2  ;;  %v363_v38 = vsel %vm351_vm2, %v361_v23, %v362_v21 }
  0xbd   :  { %414 = vst.msk [vmem:[%s627_s1 + $0x20] sm:$0xff] %vm408_vm3, %v396_v28  ;;  %v399_v44 = vadd.f32 %v362_v21, %v326_v29  ;;  %v325_v60 = vadd.f32 %v290_v33, %v236_v13  ;;  %v238_v36 = vmul.f32 0.27406862, %v222_v30  ;;  %v254_v37 = vmul.f32 0.45186275, %v222_v30 }
  0xbe   :  { %v328_v39 = vadd.f32 %v292_v34, %v239_v25  ;;  %v225_v48 = vadd.f32 %v189_v24, %v145_v50  ;;  %v224_v49 = vadd.f32 %v187_v31, %v144_v6 }
  0xbf   :  { %417 = vst.msk [vmem:[%s627_s1 + $0x38] sm:$0x3f] %vm410_vm0, %v399_v44  ;;  %v398_v61 = vadd.f32 %v363_v38, %v325_v60  ;;  %v291_v40 = vrot.slane %v254_v37, 1  ;;  %v364_v51 = vrot.slane %v238_v36, 2  ;;  %v193_v52 = vpop.permute.xlu1 %192  ;;  %v191_v53 = vpop.permute.xlu0 %190 }
  0xc0   :  { %v401_v54 = vadd.f32 %v365_v35, %v328_v39  ;;  %v241_v55 = vmul.f32 0.27406862, %v225_v48  ;;  %v257_v56 = vmul.f32 0.45186275, %v225_v48  ;;  %v240_v0 = vmul.f32 0.27406862, %v224_v49 }
  0xc1   :  { %416 = vst.msk [vmem:[%s627_s1 + $0x30] sm:$0xff] %vm408_vm3, %v398_v61  ;;  %v293_v46 = vsel %vm278_vm1, %v291_v40, %v292_v34  ;;  %v366_v62 = vsel %vm351_vm2, %v364_v51, %v365_v35  ;;  %v256_v50 = vmul.f32 0.45186275, %v224_v49  ;;  %v227_v1 = vadd.f32 %v193_v52, %v147_v27 }
  0xc2   :  { %419 = vst.msk [vmem:[%s627_s1 + $0x48] sm:$0x3f] %vm410_vm0, %v401_v54  ;;  %v327_v41 = vadd.f32 %v293_v46, %v238_v36  ;;  %v295_v42 = vrot.slane %v257_v56, 1  ;;  %v368_v57 = vrot.slane %v241_v55, 2  ;;  %v367_v58 = vrot.slane %v240_v0, 2 }
  0xc3   :  { %v294_v2 = vrot.slane %v256_v50, 1  ;;  %v243_v3 = vmul.f32 0.27406862, %v227_v1  ;;  %v259_v4 = vmul.f32 0.45186275, %v227_v1  ;;  %v226_v5 = vadd.f32 %v191_v53, %v146_v32  ;;  %v197_v6 = vpop.permute.xlu1 %196  ;;  %v195_v11 = vpop.permute.xlu0 %194 }
  0xc4   :  { %v400_v8 = vadd.f32 %v366_v62, %v327_v41  ;;  %v330_v9 = vadd.f32 %v295_v42, %v241_v55  ;;  %v229_v10 = vadd.f32 %v197_v6, %v149_v45  ;;  %v369_v13 = vsel %vm351_vm2, %v367_v58, %v368_v57 }
  0xc5   :  { %v296_v12 = vsel %vm278_vm1, %v294_v2, %v295_v42  ;;  %v298_v14 = vrot.slane %v259_v4, 1  ;;  %v242_v15 = vmul.f32 0.27406862, %v226_v5  ;;  %v371_v16 = vrot.slane %v243_v3, 2 }
  0xc6   :  { %418 = vst.msk [vmem:[%s627_s1 + $0x40] sm:$0xff] %vm408_vm3, %v400_v8  ;;  %v403_v43 = vadd.f32 %v368_v57, %v330_v9  ;;  %v329_v59 = vadd.f32 %v296_v12, %v240_v0  ;;  %v258_v17 = vmul.f32 0.45186275, %v226_v5  ;;  %v245_v63 = vmul.f32 0.27406862, %v229_v10 }
  0xc7   :  { %v332_v47 = vadd.f32 %v298_v14, %v243_v3  ;;  %v261_v18 = vmul.f32 0.45186275, %v229_v10  ;;  %v228_v19 = vadd.f32 %v195_v11, %v148_v7  ;;  %v370_v22 = vrot.slane %v242_v15, 2 }
  0xc8   :  { %421 = vst.msk [vmem:[%s627_s1 + $0x58] sm:$0x3f] %vm410_vm0, %v403_v43  ;;  %v402_v20 = vadd.f32 %v369_v13, %v329_v59  ;;  %v297_v21 = vrot.slane %v258_v17, 1  ;;  %v374_v24 = vrot.slane %v245_v63, 2 }
  0xc9   :  { %v405_v23 = vadd.f32 %v371_v16, %v332_v47  ;;  %v301_v25 = vrot.slane %v261_v18, 1  ;;  %v244_v26 = vmul.f32 0.27406862, %v228_v19  ;;  %v260_v28 = vmul.f32 0.45186275, %v228_v19 }
  0xca   :  { %420 = vst.msk [vmem:[%s627_s1 + $0x50] sm:$0xff] %vm408_vm3, %v402_v20  ;;  %v299_v27 = vsel %vm278_vm1, %v297_v21, %v298_v14  ;;  %v372_v31 = vsel %vm351_vm2, %v370_v22, %v371_v16 }
  0xcb   :  { %423 = vst.msk [vmem:[%s627_s1 + $0x68] sm:$0x3f] %vm410_vm0, %v405_v23  ;;  %v331_v29 = vadd.f32 %v299_v27, %v242_v15  ;;  %v334_v30 = vadd.f32 %v301_v25, %v245_v63  ;;  %v300_v32 = vrot.slane %v260_v28, 1  ;;  %v373_v33 = vrot.slane %v244_v26, 2 }
  0xcd   :  { %v404_v34 = vadd.f32 %v372_v31, %v331_v29  ;;  %v407_v35 = vadd.f32 %v374_v24, %v334_v30  ;;  %v302_v44 = vsel %vm278_vm1, %v300_v32, %v301_v25  ;;  %v375_v36 = vsel %vm351_vm2, %v373_v33, %v374_v24 }
  0xce   :  { %v333_v60 = vadd.f32 %v302_v44, %v244_v26 }
  0xcf   :  { %422 = vst.msk [vmem:[%s627_s1 + $0x60] sm:$0xff] %vm408_vm3, %v404_v34 }
  0xd0   :  { %425 = vst.msk [vmem:[%s627_s1 + $0x78] sm:$0x3f] %vm410_vm0, %v407_v35  ;;  %v406_v37 = vadd.f32 %v375_v36, %v333_v60 }
  0xd2   :  { %424 = vst.msk [vmem:[%s627_s1 + $0x70] sm:$0xff] %vm408_vm3, %v406_v37 }
  0xd3   :  { %430 = vsyncpa [#allocation3], 1 }

</bundles_post_ra>
